<compile_context>
chip_gen: v7x
topology: tpu7x:2x2x1
jax: 0.10.0
libtpu: 0.0.40
codegen_flags: <defaults>
</compile_context>

<pallas_src>
import math
import functools

import jax
import jax.numpy as jnp
from jax import lax
from jax.experimental import pallas as pl
from jax.experimental.pallas import tpu as pltpu


def _round_up(n: int, m: int) -> int:
    return ((n + m - 1) // m) * m


# --------------------------------------------------------------------------
# Row L2-normalization kernel (F.normalize(x, p=2, dim=1), eps=1e-12)
# Emits the MXU operand dtype directly; optionally folds a scale factor in.
# --------------------------------------------------------------------------
def _make_normalize_kernel(scale: float):
    def kernel(x_ref, o_ref):
        x = x_ref[...].astype(jnp.float32)                 # (tile_R, D)
        ssq = jnp.sum(x * x, axis=1, keepdims=True)        # (tile_R, 1)
        # scale / max(||x||, 1e-12) == scale * rsqrt(max(||x||^2, 1e-24)); EUP rsqrt.
        inv = scale * lax.rsqrt(jnp.maximum(ssq, 1e-24))
        o_ref[...] = (x * inv).astype(o_ref.dtype)         # bf16 store by default

    return kernel


def _normalize_rows(x, tile_r: int, *, scale: float, out_dtype):
    R, D = x.shape
    assert R % tile_r == 0
    return pl.pallas_call(
        _make_normalize_kernel(scale),
        out_shape=jax.ShapeDtypeStruct((R, D), out_dtype),
        grid=(R // tile_r,),
        in_specs=[pl.BlockSpec((tile_r, D), lambda i: (i, 0))],
        out_specs=pl.BlockSpec((tile_r, D), lambda i: (i, 0)),
        compiler_params=pltpu.CompilerParams(
            dimension_semantics=("parallel",),
            vmem_limit_bytes=32 * 1024 * 1024,
        ),
    )(x)


# --------------------------------------------------------------------------
# Main tiled ArcFace kernel: cosine matmul + angular margin + scaling.
# xn already carries the factor `s`, so the matmul result is s*cos(theta).
# --------------------------------------------------------------------------
def _make_margin_kernel(margin: float, s: float, tile_c: int):
    eps = 0.0001
    min_cos = eps - 1.0
    max_cos = 1.0 - eps
    cos_m = math.cos(margin)
    sin_m = math.sin(margin)
    inv_s = 1.0 / s

    def kernel(xn_ref, wn_ref, y_ref, out_ref):
        j = pl.program_id(1)                                # class-tile index

        # NT contraction straight onto the MXU (same pattern as flash-attn QK^T;
        # no materialized transpose of the (tc, D) W tile).
        scaled_cos = lax.dot_general(
            xn_ref[...], wn_ref[...],
            dimension_numbers=(((1,), (1,)), ((), ())),
            preferred_element_type=jnp.float32,
        )                                                   # (tb, tc) = s * cos(theta)

        y = y_ref[...]                                      # (tb, 1) int32
        class_ids = j * tile_c + lax.broadcasted_iota(
            jnp.int32, scaled_cos.shape, 1)                 # global class ids of this tile
        mask = class_ids == y                               # bool (tb, tc)

        # gather(1, y): target-class scaled cosine per row (0 if target not in tile).
        gathered = jnp.sum(jnp.where(mask, scaled_cos, 0.0), axis=1, keepdims=True)
        cos_yi = jnp.clip(gathered * inv_s, min_cos, max_cos)      # (tb, 1)
        sin_yi = jnp.sqrt(jnp.maximum(1.0 - cos_yi * cos_yi, 0.0))
        corrected = s * (cos_yi * cos_m - sin_yi * sin_m)          # s*cos(theta_yi + m)

        # Single full-tile select: target column <- s*cos(theta_yi + m),
        # everything else keeps s*cos(theta).  (Only differs from the reference
        # when the clamp is active, i.e. by at most ~s*eps.)
        out_ref[...] = jnp.where(mask, corrected, scaled_cos).astype(out_ref.dtype)

    return kernel


def arc_linear_forward(x, W, y, *, margin: float, s: float,
                       tile_b: int = 512, tile_c: int = 1024,
                       compute_dtype=jnp.bfloat16, out_dtype=jnp.float32):
    """Pallas implementation of ArcLinear.forward(x, y).

    x: (B, D) embeddings, W: (C, D) class centers, y: (B,) int labels.
    Returns (B, C) logits in `out_dtype`.

    Per-generation tuning: v6e likes tile_b ~1024, v5e/v7x ~512; keep tile_c a
    multiple of 128 (lane-dense output) and, on v7x, keep the class-grid extent
    >= 2 so both TensorCores get work.
    """
    B, D = x.shape
    C, D2 = W.shape
    assert D == D2

    # Tile sizes: lane-dense output (tile_c multiple of 128), sublane-aligned rows.
    tb = min(tile_b, _round_up(B, 8))
    tc = min(tile_c, _round_up(C, 128))
    B_pad = _round_up(B, tb)
    C_pad = _round_up(C, tc)

    # Pad only when needed (padded rows must stay zero so they normalize to zero).
    xp = x if B_pad == B else jnp.pad(x, ((0, B_pad - B), (0, 0)))
    Wp = W if C_pad == C else jnp.pad(W, ((0, C_pad - C), (0, 0)))
    y2d = jnp.pad(y.astype(jnp.int32), (0, B_pad - B)).reshape(B_pad, 1)

    # Hoisted, one-shot row normalization, emitted directly in the MXU operand
    # dtype.  `s` is folded into the x normalization so the main kernel never
    # runs a full-tile `s *` pass.
    xn = _normalize_rows(xp, tb, scale=s, out_dtype=compute_dtype)
    wn = _normalize_rows(Wp, tc, scale=1.0, out_dtype=compute_dtype)

    kernel = _make_margin_kernel(margin, s, tc)
    out = pl.pallas_call(
        kernel,
        out_shape=jax.ShapeDtypeStruct((B_pad, C_pad), out_dtype),
        grid_spec=pltpu.PrefetchScalarGridSpec(
            num_scalar_prefetch=0,
            grid=(B_pad // tb, C_pad // tc),      # class axis fastest-varying
            in_specs=[
                pl.BlockSpec((tb, D), lambda i, j: (i, 0)),   # xn tile (reused over j)
                pl.BlockSpec((tc, D), lambda i, j: (j, 0)),   # W tile streamed over classes
                pl.BlockSpec((tb, 1), lambda i, j: (i, 0)),   # labels for this batch tile
            ],
            out_specs=pl.BlockSpec((tb, tc), lambda i, j: (i, j)),
        ),
        compiler_params=pltpu.CompilerParams(
            dimension_semantics=("parallel", "parallel"),
            vmem_limit_bytes=32 * 1024 * 1024,
        ),
    )(xn, wn, y2d)

    return out[:B, :C]


# --------------------------------------------------------------------------
# Plain-JAX reference mirroring the PyTorch module
# --------------------------------------------------------------------------
def _reference(x, W, y, margin, s):
    eps = 0.0001
    xn = x / jnp.maximum(jnp.linalg.norm(x, axis=1, keepdims=True), 1e-12)
    wn = W / jnp.maximum(jnp.linalg.norm(W, axis=1, keepdims=True), 1e-12)
    cos = xn @ wn.T
    cos_yi = jnp.take_along_axis(cos, y.reshape(-1, 1), axis=1)
    cos_yi = jnp.clip(cos_yi, eps - 1.0, 1.0 - eps)
    theta = jnp.arccos(cos_yi)
    cos_yi_m = jnp.cos(theta + margin)
    one_hot = jax.nn.one_hot(y, cos.shape[1], dtype=cos.dtype)
    return s * (cos + one_hot * (cos_yi_m - cos_yi))


if __name__ == "__main__":
    # Module hyperparameters (synthetic, deterministic, small shapes)
    nfeat = 32
    nclass = 16
    margin = 0.2
    scale = 30.0
    batch = 8

    key = jax.random.PRNGKey(0)
    k_x, k_w, k_y = jax.random.split(key, 3)

    x = jax.random.normal(k_x, (batch, nfeat), dtype=jnp.float32)
    y = jax.random.randint(k_y, (batch,), 0, nclass, dtype=jnp.int32)

    # Xavier-uniform init of W (nclass, nfeat), as in nn.init.xavier_uniform_
    bound = math.sqrt(6.0 / (nfeat + nclass))
    W = jax.random.uniform(k_w, (nclass, nfeat), dtype=jnp.float32,
                           minval=-bound, maxval=bound)

    ref = _reference(x, W, y, margin, scale)

    # Strict check: f32 MXU operands must match the reference closely.
    fwd_f32 = jax.jit(functools.partial(arc_linear_forward, margin=margin, s=scale,
                                        compute_dtype=jnp.float32))
    out_f32 = jax.block_until_ready(fwd_f32(x, W, y))
    assert out_f32.shape == (batch, nclass)
    assert jnp.allclose(out_f32, ref, atol=1e-3, rtol=1e-3), "f32 path mismatch vs reference"

    # Default (perf) path: bf16 MXU operands; tolerance loosened for the bf16
    # rounding of the normalized operands (error is amplified by s=30).
    fwd = jax.jit(functools.partial(arc_linear_forward, margin=margin, s=scale))
    out = jax.block_until_ready(fwd(x, W, y))
    assert out.shape == (batch, nclass)
    assert jnp.allclose(out, ref, atol=0.5, rtol=2e-2), "bf16 path mismatch vs reference"

    print("KERNEL_OK")
</pallas_src>

<mosaic_0001>
module attributes {stable_mosaic.version = 11 : i64} {
  func.func @kernel(%arg0: i32, %arg1: memref<128x32xf32, #tpu.memory_space<vmem>>, %arg2: memref<128x32xf32, #tpu.memory_space<vmem>>) attributes {dimension_semantics = [#tpu.dimension_semantics<parallel>], iteration_bounds = array<i64: 1>, scalar_prefetch = 0 : i64, scratch_operands = 0 : i64, tpu.core_type = #tpu.core_type<tc>, window_params = [{transform_indices = @transform_0, window_bounds = array<i64: 128, 32>}, {transform_indices = @transform_1, window_bounds = array<i64: 128, 32>}]} {
    %c0 = arith.constant 0 : index
    %c0_0 = arith.constant 0 : index
    %0 = vector.load %arg1[%c0, %c0_0] : memref<128x32xf32, #tpu.memory_space<vmem>>, vector<128x32xf32>
    %1 = arith.mulf %0, %0 : vector<128x32xf32>
    %cst = arith.constant dense<0.000000e+00> : vector<128xf32>
    %2 = vector.multi_reduction <add>, %1, %cst [1] : vector<128x32xf32> to vector<128xf32>
    %3 = vector.shape_cast %2 : vector<128xf32> to vector<128x1xf32>
    %cst_1 = arith.constant 1.000000e-24 : f32
    %4 = vector.broadcast %cst_1 : f32 to vector<128x1xf32>
    %5 = arith.maximumf %3, %4 : vector<128x1xf32>
    %6 = math.rsqrt %5 : vector<128x1xf32>
    %cst_2 = arith.constant 1.000000e+00 : f32
    %7 = vector.broadcast %cst_2 : f32 to vector<128x1xf32>
    %8 = arith.mulf %7, %6 : vector<128x1xf32>
    %9 = vector.broadcast %8 : vector<128x1xf32> to vector<128x32xf32>
    %10 = arith.mulf %0, %9 : vector<128x32xf32>
    %c0_3 = arith.constant 0 : index
    %c0_4 = arith.constant 0 : index
    %11 = vector.load %arg2[%c0_3, %c0_4] : memref<128x32xf32, #tpu.memory_space<vmem>>, vector<128x32xf32>
    tpu.vector_store %arg2[%c0_3, %c0_4], %10 {strides = array<i32>} : memref<128x32xf32, #tpu.memory_space<vmem>>, vector<128x32xf32>,
    return
  }
  func.func @transform_0(%arg0: i32) -> (i32, i32) {
    %c0_i32 = arith.constant 0 : i32
    %c0_i32_0 = arith.constant 0 : i32
    return %arg0, %c0_i32 : i32, i32
  }
  func.func @transform_1(%arg0: i32) -> (i32, i32) {
    %c0_i32 = arith.constant 0 : i32
    %c0_i32_0 = arith.constant 0 : i32
    return %arg0, %c0_i32 : i32, i32
  }
}

module attributes {stable_mosaic.version = 11 : i64} {
  func.func @kernel(%arg0: i32, %arg1: memref<8x32xf32, #tpu.memory_space<vmem>>, %arg2: memref<8x32xf32, #tpu.memory_space<vmem>>) attributes {dimension_semantics = [#tpu.dimension_semantics<parallel>], iteration_bounds = array<i64: 1>, scalar_prefetch = 0 : i64, scratch_operands = 0 : i64, tpu.core_type = #tpu.core_type<tc>, window_params = [{transform_indices = @transform_0, window_bounds = array<i64: 8, 32>}, {transform_indices = @transform_1, window_bounds = array<i64: 8, 32>}]} {
    %c0 = arith.constant 0 : index
    %c0_0 = arith.constant 0 : index
    %0 = vector.load %arg1[%c0, %c0_0] : memref<8x32xf32, #tpu.memory_space<vmem>>, vector<8x32xf32>
    %1 = arith.mulf %0, %0 : vector<8x32xf32>
    %cst = arith.constant dense<0.000000e+00> : vector<8xf32>
    %2 = vector.multi_reduction <add>, %1, %cst [1] : vector<8x32xf32> to vector<8xf32>
    %3 = vector.shape_cast %2 : vector<8xf32> to vector<8x1xf32>
    %cst_1 = arith.constant 1.000000e-24 : f32
    %4 = vector.broadcast %cst_1 : f32 to vector<8x1xf32>
    %5 = arith.maximumf %3, %4 : vector<8x1xf32>
    %6 = math.rsqrt %5 : vector<8x1xf32>
    %cst_2 = arith.constant 3.000000e+01 : f32
    %7 = vector.broadcast %cst_2 : f32 to vector<8x1xf32>
    %8 = arith.mulf %7, %6 : vector<8x1xf32>
    %9 = vector.broadcast %8 : vector<8x1xf32> to vector<8x32xf32>
    %10 = arith.mulf %0, %9 : vector<8x32xf32>
    %c0_3 = arith.constant 0 : index
    %c0_4 = arith.constant 0 : index
    %11 = vector.load %arg2[%c0_3, %c0_4] : memref<8x32xf32, #tpu.memory_space<vmem>>, vector<8x32xf32>
    tpu.vector_store %arg2[%c0_3, %c0_4], %10 {strides = array<i32>} : memref<8x32xf32, #tpu.memory_space<vmem>>, vector<8x32xf32>,
    return
  }
  func.func @transform_0(%arg0: i32) -> (i32, i32) {
    %c0_i32 = arith.constant 0 : i32
    %c0_i32_0 = arith.constant 0 : i32
    return %arg0, %c0_i32 : i32, i32
  }
  func.func @transform_1(%arg0: i32) -> (i32, i32) {
    %c0_i32 = arith.constant 0 : i32
    %c0_i32_0 = arith.constant 0 : i32
    return %arg0, %c0_i32 : i32, i32
  }
}

module attributes {stable_mosaic.version = 11 : i64} {
  func.func @kernel(%arg0: i32, %arg1: i32, %arg2: memref<8x32xf32, #tpu.memory_space<vmem>>, %arg3: memref<128x32xf32, #tpu.memory_space<vmem>>, %arg4: memref<8x1xi32, #tpu.memory_space<vmem>>, %arg5: memref<8x128xf32, #tpu.memory_space<vmem>>) attributes {dimension_semantics = [#tpu.dimension_semantics<parallel>, #tpu.dimension_semantics<parallel>], iteration_bounds = array<i64: 1, 1>, scalar_prefetch = 0 : i64, scratch_operands = 0 : i64, tpu.core_type = #tpu.core_type<tc>, window_params = [{transform_indices = @transform_0, window_bounds = array<i64: 8, 32>}, {transform_indices = @transform_1, window_bounds = array<i64: 128, 32>}, {transform_indices = @transform_2, window_bounds = array<i64: 8, 1>}, {transform_indices = @transform_3, window_bounds = array<i64: 8, 128>}]} {
    %c0 = arith.constant 0 : index
    %c0_0 = arith.constant 0 : index
    %0 = vector.load %arg2[%c0, %c0_0] : memref<8x32xf32, #tpu.memory_space<vmem>>, vector<8x32xf32>
    %c0_1 = arith.constant 0 : index
    %c0_2 = arith.constant 0 : index
    %1 = vector.load %arg3[%c0_1, %c0_2] : memref<128x32xf32, #tpu.memory_space<vmem>>, vector<128x32xf32>
    %cst = arith.constant dense<0.000000e+00> : vector<8x128xf32>
    %2 = tpu.matmul %0, %1, %cst {dimension_numbers = #tpu.dot_dimension_numbers<[1], [1], [0], [0], [0, 0, 1, 0], [], []>} : vector<8x32xf32>, vector<128x32xf32>, vector<8x128xf32> -> vector<8x128xf32>
    %c0_3 = arith.constant 0 : index
    %c0_4 = arith.constant 0 : index
    %3 = vector.load %arg4[%c0_3, %c0_4] : memref<8x1xi32, #tpu.memory_space<vmem>>, vector<8x1xi32>
    %c128_i32 = arith.constant 128 : i32
    %4 = arith.muli %arg1, %c128_i32 : i32
    %5 = tpu.iota {dimensions = array<i32: 1>} : vector<8x128xi32>
    %6 = vector.broadcast %4 : i32 to vector<8x128xi32>
    %7 = arith.addi %6, %5 : vector<8x128xi32>
    %8 = vector.broadcast %3 : vector<8x1xi32> to vector<8x128xi32>
    %9 = arith.cmpi eq, %7, %8 : vector<8x128xi32>
    %cst_5 = arith.constant 0.000000e+00 : f32
    %10 = vector.broadcast %cst_5 : f32 to vector<8x128xf32>
    %11 = arith.select %9, %2, %10 : vector<8x128xi1>, vector<8x128xf32>
    %cst_6 = arith.constant dense<0.000000e+00> : vector<8xf32>
    %12 = vector.multi_reduction <add>, %11, %cst_6 [1] : vector<8x128xf32> to vector<8xf32>
    %13 = vector.shape_cast %12 : vector<8xf32> to vector<8x1xf32>
    %cst_7 = arith.constant 0.0333333351 : f32
    %14 = vector.broadcast %cst_7 : f32 to vector<8x1xf32>
    %15 = arith.mulf %13, %14 : vector<8x1xf32>
    %cst_8 = arith.constant -0.999899983 : f32
    %cst_9 = arith.constant 0.999899983 : f32
    %16 = vector.broadcast %cst_8 : f32 to vector<8x1xf32>
    %17 = arith.maximumf %16, %15 : vector<8x1xf32>
    %18 = vector.broadcast %cst_9 : f32 to vector<8x1xf32>
    %19 = arith.minimumf %18, %17 : vector<8x1xf32>
    %20 = arith.mulf %19, %19 : vector<8x1xf32>
    %cst_10 = arith.constant 1.000000e+00 : f32
    %21 = vector.broadcast %cst_10 : f32 to vector<8x1xf32>
    %22 = arith.subf %21, %20 : vector<8x1xf32>
    %cst_11 = arith.constant 0.000000e+00 : f32
    %23 = vector.broadcast %cst_11 : f32 to vector<8x1xf32>
    %24 = arith.maximumf %22, %23 : vector<8x1xf32>
    %25 = math.sqrt %24 : vector<8x1xf32>
    %cst_12 = arith.constant 0.980066597 : f32
    %26 = vector.broadcast %cst_12 : f32 to vector<8x1xf32>
    %27 = arith.mulf %19, %26 : vector<8x1xf32>
    %cst_13 = arith.constant 0.198669329 : f32
    %28 = vector.broadcast %cst_13 : f32 to vector<8x1xf32>
    %29 = arith.mulf %25, %28 : vector<8x1xf32>
    %30 = arith.subf %27, %29 : vector<8x1xf32>
    %cst_14 = arith.constant 3.000000e+01 : f32
    %31 = vector.broadcast %cst_14 : f32 to vector<8x1xf32>
    %32 = arith.mulf %31, %30 : vector<8x1xf32>
    %33 = vector.shape_cast %32 : vector<8x1xf32> to vector<8x1xf32>
    %34 = vector.broadcast %33 : vector<8x1xf32> to vector<8x128xf32>
    %35 = arith.select %9, %34, %2 : vector<8x128xi1>, vector<8x128xf32>
    %c0_15 = arith.constant 0 : index
    %c0_16 = arith.constant 0 : index
    %36 = vector.load %arg5[%c0_15, %c0_16] : memref<8x128xf32, #tpu.memory_space<vmem>>, vector<8x128xf32>
    tpu.vector_store %arg5[%c0_15, %c0_16], %35 {strides = array<i32>} : memref<8x128xf32, #tpu.memory_space<vmem>>, vector<8x128xf32>,
    return
  }
  func.func @transform_0(%arg0: i32, %arg1: i32) -> (i32, i32) {
    %c0_i32 = arith.constant 0 : i32
    %c0_i32_0 = arith.constant 0 : i32
    return %arg0, %c0_i32 : i32, i32
  }
  func.func @transform_1(%arg0: i32, %arg1: i32) -> (i32, i32) {
    %c0_i32 = arith.constant 0 : i32
    %c0_i32_0 = arith.constant 0 : i32
    return %arg1, %c0_i32 : i32, i32
  }
  func.func @transform_2(%arg0: i32, %arg1: i32) -> (i32, i32) {
    %c0_i32 = arith.constant 0 : i32
    %c0_i32_0 = arith.constant 0 : i32
    return %arg0, %c0_i32 : i32, i32
  }
  func.func @transform_3(%arg0: i32, %arg1: i32) -> (i32, i32) {
    %c0_i32 = arith.constant 0 : i32
    return %arg0, %arg1 : i32, i32
  }
}

</mosaic_0001>

<bundles_post_ra>
// kernel: arc_linear_forward.4
= control target key start
LH: loop header
LB: loop body
LE: loop exit
PB: predicated region body
PF: predicated region fallthrough
CT: control target
= control target key end

     0   :  { %vm40_vm0 = vcmask 261120   ;;  %s407_s0 = inlined_call_operand.vmem [shape: f32[128,32], index: 0, kind: input, shape index: {}]   ;;  %s408_s1 = inlined_call_operand.vmem [shape: f32[128,32], index: 1, kind: output, shape index: {}]  }
   0x1   :  { %v202_v0 = vld [vmem:[%s407_s0 + $0x10] sm:$0xff]  ;;  %v207_v1 = vld [vmem:[%s407_s0] sm:$0xff]  ;;  %v212_v2 = vld [vmem:[%s407_s0 + $0x18] sm:$0xff] }
   0x2   :  { %v26_v3 = vmul.f32 %v202_v0, %v202_v0  ;;  %v24_v4 = vmul.f32 %v207_v1, %v207_v1  ;;  %v27_v5 = vmul.f32 %v212_v2, %v212_v2  ;;  %v223_v6 = vld [vmem:[%s407_s0 + $0x8] sm:$0xff]  ;;  %v235_v9 = vld [vmem:[%s407_s0 + $0x20] sm:$0xff]  ;;  %v248_v16 = vld [vmem:[%s407_s0 + $0x38] sm:$0xff] }
   0x3   :  { %v25_v7 = vmul.f32 %v223_v6, %v223_v6  ;;  %v230_v8 = vld [vmem:[%s407_s0 + $0x28] sm:$0xff]  ;;  %v28_v15 = vmul.f32 %v235_v9, %v235_v9  ;;  %v253_v17 = vld [vmem:[%s407_s0 + $0x30] sm:$0xff]  ;;  %v31_v20 = vmul.f32 %v248_v16, %v248_v16  ;;  %v269_v23 = vld [vmem:[%s407_s0 + $0x40] sm:$0xff] }
   0x4   :  { %v47_v10 = vsel %vm40_vm0, %v26_v3, 0.0  ;;  %v41_v11 = vsel %vm40_vm0, %v24_v4, 0.0  ;;  %v50_v12 = vsel %vm40_vm0, %v27_v5, 0.0  ;;  %v29_v14 = vmul.f32 %v230_v8, %v230_v8  ;;  %v264_v22 = vld [vmem:[%s407_s0 + $0x48] sm:$0xff]  ;;  %v280_v28 = vld [vmem:[%s407_s0 + $0x58] sm:$0xff]  ;;  %v285_v29 = vld [vmem:[%s407_s0 + $0x50] sm:$0xff] }
   0x5   :  { %48 = vadd.xlane.f32.xlu1 %v47_v10  ;;  %42 = vadd.xlane.f32.xlu0 %v41_v11  ;;  %v44_v13 = vsel %vm40_vm0, %v25_v7, 0.0  ;;  %v53_v19 = vsel %vm40_vm0, %v28_v15, 0.0  ;;  %v30_v21 = vmul.f32 %v253_v17, %v253_v17  ;;  %v62_v24 = vsel %vm40_vm0, %v31_v20, 0.0  ;;  %v296_v34 = vld [vmem:[%s407_s0 + $0x68] sm:$0xff]  ;;  %v301_v35 = vld [vmem:[%s407_s0 + $0x60] sm:$0xff]  ;;  %v312_v40 = vld [vmem:[%s407_s0 + $0x78] sm:$0xff] }
   0x6   :  { %v56_v18 = vsel %vm40_vm0, %v29_v14, 0.0  ;;  %v33_v26 = vmul.f32 %v264_v22, %v264_v22  ;;  %v32_v27 = vmul.f32 %v269_v23, %v269_v23  ;;  %v35_v32 = vmul.f32 %v280_v28, %v280_v28  ;;  %v317_v41 = vld [vmem:[%s407_s0 + $0x70] sm:$0xff] }
   0x7   :  { %v59_v25 = vsel %vm40_vm0, %v30_v21, 0.0  ;;  %v34_v33 = vmul.f32 %v285_v29, %v285_v29  ;;  %v37_v38 = vmul.f32 %v296_v34, %v296_v34  ;;  %v36_v39 = vmul.f32 %v301_v35, %v301_v35 }
   0x8   :  { %v68_v30 = vsel %vm40_vm0, %v33_v26, 0.0  ;;  %v65_v31 = vsel %vm40_vm0, %v32_v27, 0.0  ;;  %v74_v36 = vsel %vm40_vm0, %v35_v32, 0.0  ;;  %v39_v44 = vmul.f32 %v312_v40, %v312_v40 }
   0x9   :  { %51 = vadd.xlane.f32.xlu1 %v50_v12  ;;  %45 = vadd.xlane.f32.xlu0 %v44_v13  ;;  %v71_v37 = vsel %vm40_vm0, %v34_v33, 0.0  ;;  %v80_v42 = vsel %vm40_vm0, %v37_v38, 0.0  ;;  %v77_v43 = vsel %vm40_vm0, %v36_v39, 0.0  ;;  %v38_v45 = vmul.f32 %v317_v41, %v317_v41 }
   0xa   :  { %v86_v46 = vsel %vm40_vm0, %v39_v44, 0.0 }
   0xb   :  { %v83_v47 = vsel %vm40_vm0, %v38_v45, 0.0 }
   0xd   :  { %57 = vadd.xlane.f32.xlu1 %v56_v18  ;;  %54 = vadd.xlane.f32.xlu0 %v53_v19 }
  0x11   :  { %63 = vadd.xlane.f32.xlu1 %v62_v24  ;;  %60 = vadd.xlane.f32.xlu0 %v59_v25 }
  0x15   :  { %69 = vadd.xlane.f32.xlu1 %v68_v30  ;;  %66 = vadd.xlane.f32.xlu0 %v65_v31 }
  0x19   :  { %75 = vadd.xlane.f32.xlu1 %v74_v36  ;;  %72 = vadd.xlane.f32.xlu0 %v71_v37 }
  0x1d   :  { %81 = vadd.xlane.f32.xlu1 %v80_v42  ;;  %78 = vadd.xlane.f32.xlu0 %v77_v43 }
  0x21   :  { %87 = vadd.xlane.f32.xlu1 %v86_v46  ;;  %84 = vadd.xlane.f32.xlu0 %v83_v47 }
  0x92   :  { %v49_v48 = vpop.xlane.xlu1 %48  ;;  %v43_v49 = vpop.xlane.xlu0 %42 }
  0x93   :  { %v91_v50 = vmax.f32 %v49_v48, 1e-24  ;;  %v89_v51 = vmax.f32 %v43_v49, 1e-24 }
  0x95   :  { %157 = vrsqrt.f32 %v91_v50 }
  0x96   :  { %159 = vrsqrt.f32 %v89_v51  ;;  %v52_v52 = vpop.xlane.xlu1 %51  ;;  %v46_v53 = vpop.xlane.xlu0 %45 }
  0x97   :  { %v92_v54 = vmax.f32 %v52_v52, 1e-24  ;;  %v90_v55 = vmax.f32 %v46_v53, 1e-24 }
  0x99   :  { %161 = vrsqrt.f32 %v92_v54 }
  0x9a   :  { %163 = vrsqrt.f32 %v90_v55  ;;  %v58_v56 = vpop.xlane.xlu1 %57  ;;  %v55_v57 = vpop.xlane.xlu0 %54 }
  0x9b   :  { %v94_v58 = vmax.f32 %v58_v56, 1e-24  ;;  %v93_v59 = vmax.f32 %v55_v57, 1e-24 }
  0x9d   :  { %165 = vrsqrt.f32 %v94_v58 }
  0x9e   :  { %167 = vrsqrt.f32 %v93_v59  ;;  %v64_v60 = vpop.xlane.xlu1 %63  ;;  %v61_v61 = vpop.xlane.xlu0 %60 }
  0x9f   :  { %v158_v62 = vpop.eup %157  ;;  %v96_v63 = vmax.f32 %v64_v60, 1e-24  ;;  %v95_v3 = vmax.f32 %v61_v61, 1e-24 }
  0xa0   :  { %v160_v4 = vpop.eup %159  ;;  %v123_v5 = vmul.f32 %v158_v62, %v202_v0 }
  0xa1   :  { %v121_v7 = vmul.f32 %v160_v4, %v207_v1  ;;  %169 = vrsqrt.f32 %v96_v63 }
  0xa2   :  { %139 = vst.msk [vmem:[%s408_s1 + $0x10] sm:$0xff] %vm40_vm0, %v123_v5  ;;  %171 = vrsqrt.f32 %v95_v3  ;;  %v70_v10 = vpop.xlane.xlu1 %69  ;;  %v67_v11 = vpop.xlane.xlu0 %66 }
  0xa3   :  { %v162_v12 = vpop.eup %161  ;;  %137 = vst.msk [vmem:[%s408_s1] sm:$0xff] %vm40_vm0, %v121_v7  ;;  %v98_v13 = vmax.f32 %v70_v10, 1e-24  ;;  %v97_v14 = vmax.f32 %v67_v11, 1e-24 }
  0xa4   :  { %v164_v0 = vpop.eup %163  ;;  %v124_v1 = vmul.f32 %v162_v12, %v212_v2 }
  0xa5   :  { %v122_v15 = vmul.f32 %v164_v0, %v223_v6  ;;  %173 = vrsqrt.f32 %v98_v13 }
  0xa6   :  { %140 = vst.msk [vmem:[%s408_s1 + $0x18] sm:$0xff] %vm40_vm0, %v124_v1  ;;  %175 = vrsqrt.f32 %v97_v14  ;;  %v76_v18 = vpop.xlane.xlu1 %75  ;;  %v73_v19 = vpop.xlane.xlu0 %72 }
  0xa7   :  { %v166_v20 = vpop.eup %165  ;;  %138 = vst.msk [vmem:[%s408_s1 + $0x8] sm:$0xff] %vm40_vm0, %v122_v15  ;;  %v100_v21 = vmax.f32 %v76_v18, 1e-24  ;;  %v99_v24 = vmax.f32 %v73_v19, 1e-24 }
  0xa8   :  { %v168_v2 = vpop.eup %167  ;;  %v126_v6 = vmul.f32 %v166_v20, %v230_v8 }
  0xa9   :  { %v125_v25 = vmul.f32 %v168_v2, %v235_v9  ;;  %177 = vrsqrt.f32 %v100_v21 }
  0xaa   :  { %142 = vst.msk [vmem:[%s408_s1 + $0x28] sm:$0xff] %vm40_vm0, %v126_v6  ;;  %179 = vrsqrt.f32 %v99_v24  ;;  %v82_v26 = vpop.xlane.xlu1 %81  ;;  %v79_v27 = vpop.xlane.xlu0 %78 }
  0xab   :  { %v170_v30 = vpop.eup %169  ;;  %141 = vst.msk [vmem:[%s408_s1 + $0x20] sm:$0xff] %vm40_vm0, %v125_v25  ;;  %v102_v31 = vmax.f32 %v82_v26, 1e-24  ;;  %v101_v32 = vmax.f32 %v79_v27, 1e-24 }
  0xac   :  { %v172_v8 = vpop.eup %171  ;;  %v128_v9 = vmul.f32 %v170_v30, %v248_v16 }
  0xad   :  { %v127_v33 = vmul.f32 %v172_v8, %v253_v17  ;;  %181 = vrsqrt.f32 %v102_v31 }
  0xae   :  { %144 = vst.msk [vmem:[%s408_s1 + $0x38] sm:$0xff] %vm40_vm0, %v128_v9  ;;  %183 = vrsqrt.f32 %v101_v32  ;;  %v88_v36 = vpop.xlane.xlu1 %87  ;;  %v85_v37 = vpop.xlane.xlu0 %84 }
  0xaf   :  { %v174_v38 = vpop.eup %173  ;;  %143 = vst.msk [vmem:[%s408_s1 + $0x30] sm:$0xff] %vm40_vm0, %v127_v33  ;;  %v104_v39 = vmax.f32 %v88_v36, 1e-24  ;;  %v103_v42 = vmax.f32 %v85_v37, 1e-24 }
  0xb0   :  { %v176_v16 = vpop.eup %175  ;;  %v130_v17 = vmul.f32 %v174_v38, %v264_v22 }
  0xb1   :  { %v129_v43 = vmul.f32 %v176_v16, %v269_v23  ;;  %185 = vrsqrt.f32 %v104_v39 }
  0xb2   :  { %146 = vst.msk [vmem:[%s408_s1 + $0x48] sm:$0xff] %vm40_vm0, %v130_v17  ;;  %187 = vrsqrt.f32 %v103_v42 }
  0xb3   :  { %v178_v44 = vpop.eup %177  ;;  %145 = vst.msk [vmem:[%s408_s1 + $0x40] sm:$0xff] %vm40_vm0, %v129_v43 }
  0xb4   :  { %v180_v45 = vpop.eup %179  ;;  %v132_v46 = vmul.f32 %v178_v44, %v280_v28 }
  0xb5   :  { %v131_v22 = vmul.f32 %v180_v45, %v285_v29 }
  0xb6   :  { %148 = vst.msk [vmem:[%s408_s1 + $0x58] sm:$0xff] %vm40_vm0, %v132_v46 }
  0xb7   :  { %v182_v23 = vpop.eup %181  ;;  %147 = vst.msk [vmem:[%s408_s1 + $0x50] sm:$0xff] %vm40_vm0, %v131_v22 }
  0xb8   :  { %v184_v47 = vpop.eup %183  ;;  %v134_v48 = vmul.f32 %v182_v23, %v296_v34 }
  0xb9   :  { %v133_v49 = vmul.f32 %v184_v47, %v301_v35 }
  0xba   :  { %150 = vst.msk [vmem:[%s408_s1 + $0x68] sm:$0xff] %vm40_vm0, %v134_v48 }
  0xbb   :  { %v186_v28 = vpop.eup %185  ;;  %149 = vst.msk [vmem:[%s408_s1 + $0x60] sm:$0xff] %vm40_vm0, %v133_v49 }
  0xbc   :  { %v188_v29 = vpop.eup %187  ;;  %v136_v50 = vmul.f32 %v186_v28, %v312_v40 }
  0xbd   :  { %v135_v51 = vmul.f32 %v188_v29, %v317_v41 }
  0xbe   :  { %152 = vst.msk [vmem:[%s408_s1 + $0x78] sm:$0xff] %vm40_vm0, %v136_v50 }
  0xbf   :  { %151 = vst.msk [vmem:[%s408_s1 + $0x70] sm:$0xff] %vm40_vm0, %v135_v51 }

// kernel: arc_linear_forward.3
= control target key start
LH: loop header
LB: loop body
LE: loop exit
PB: predicated region body
PF: predicated region fallthrough
CT: control target
= control target key end

     0   :  { %vm10_vm0 = vcmask 261120   ;;  %s41_s0 = inlined_call_operand.vmem [shape: f32[8,32], index: 0, kind: input, shape index: {}]   ;;  %s42_s1 = inlined_call_operand.vmem [shape: f32[8,32], index: 1, kind: output, shape index: {}]  }
   0x1   :  { %v8_v0 = vld [vmem:[%s41_s0] sm:$0xff] }
   0x2   :  { %v9_v1 = vmul.f32 %v8_v0, %v8_v0 }
   0x4   :  { %v11_v2 = vsel %vm10_vm0, %v9_v1, 0.0 }
   0x5   :  { %12 = vadd.xlane.f32.xlu0 %v11_v2 }
  0x92   :  { %v13_v3 = vpop.xlane.xlu0 %12 }
  0x93   :  { %v14_v4 = vmax.f32 %v13_v3, 1e-24 }
  0x95   :  { %23 = vrsqrt.f32 %v14_v4 }
  0x9f   :  { %v24_v5 = vpop.eup %23 }
  0xa0   :  { %v16_v6 = vmul.f32 30.0, %v24_v5 }
  0xa2   :  { %v17_v7 = vmul.f32 %v16_v6, %v8_v0 }
  0xa4   :  { %18 = vst.msk [vmem:[%s42_s1] sm:$0xff] %vm10_vm0, %v17_v7 }

// kernel: arc_linear_forward.5
= control target key start
LH: loop header
LB: loop body
LE: loop exit
PB: predicated region body
PF: predicated region fallthrough
CT: control target
= control target key end

     0   :  { %vm32_vm0 = vcmask 261120   ;;  %v334_v2 = vmov 0.0|0.0   ;;  %vm335_vm2 = vmmov 0   ;;  %v336_v5 = vmov 0.0   ;;  %s450_s0 = inlined_call_operand.vmem [shape: f32[8,32], index: 0, kind: input, shape index: {}]   ;;  %s451_s1 = inlined_call_operand.vmem [shape: f32[128,32], index: 1, kind: input, shape index: {}]   ;;  %s452_s2 = inlined_call_operand.vmem [shape: s32[8,1], index: 2, kind: input, shape index: {}]   ;;  %s453_s3 = inlined_call_operand.hbm [shape: f32[8,128], index: 3, kind: output, shape index: {}]  }
   0x1   :  { %v16_v0 = vld [vmem:[%s451_s1] sm:$0xff]  ;;  %v17_v1 = vld [vmem:[%s451_s1 + $0x8] sm:$0xff]  ;;  %270 = vmatprep.subr.bf16.mxu0 %v334_v2  ;;  %vm367_vm1 = vmpackc.low %vm32_vm0, %vm32_vm0  ;;  %267 = vmatprep.mubr.msk.f32.mxu0 %vm335_vm2, %v336_v5  ;;  %v337_v6 = vmov 0  }
   0x2   :  { %v271_v3 = vpack.c.bf16 %v17_v1, %v16_v0  ;;  %307 = vset.pattern.permute.xlu0 %v337_v6  ;;  %v18_v7 = vld [vmem:[%s451_s1 + $0x10] sm:$0xff]  ;;  %v19_v8 = vld [vmem:[%s451_s1 + $0x18] sm:$0xff]  ;;  %v154_v9 = vld [vmem:[%s452_s2] sm:$0xff] }
   0x4   :  { %273 = vmatpush3.bf16.xpose.msk.msra.mxu0 %vm367_vm1, %v271_v3 }
   0x5   :  { %274 = vmatprep.subr.bf16.mxu0 %v334_v2 }
   0x6   :  { %8 = vsyncpa [#allocation3], 0  ;;  %v275_v10 = vpack.c.bf16 %v19_v8, %v18_v7  ;;  %161 = vperm.xlu0 %307, %v154_v9   ;;  %v20_v11 = vld [vmem:[%s451_s1 + $0x20] sm:$0xff]  ;;  %v21_v12 = vld [vmem:[%s451_s1 + $0x28] sm:$0xff]  ;;  %v156_v30 = vlaneseq }
   0x7   :  { %v279_v13 = vpack.c.bf16 %v21_v12, %v20_v11  ;;  %v22_v14 = vld [vmem:[%s451_s1 + $0x30] sm:$0xff]  ;;  %v23_v15 = vld [vmem:[%s451_s1 + $0x38] sm:$0xff]  ;;  %v24_v17 = vld [vmem:[%s451_s1 + $0x40] sm:$0xff] }
   0x8   :  { %v283_v16 = vpack.c.bf16 %v23_v15, %v22_v14  ;;  %v25_v18 = vld [vmem:[%s451_s1 + $0x48] sm:$0xff]  ;;  %v26_v20 = vld [vmem:[%s451_s1 + $0x50] sm:$0xff]  ;;  %v27_v21 = vld [vmem:[%s451_s1 + $0x58] sm:$0xff]  ;;  %v157_v31 = vand.u32 127, %v156_v30 }
   0x9   :  { %v287_v19 = vpack.c.bf16 %v25_v18, %v24_v17  ;;  %v291_v22 = vpack.c.bf16 %v27_v21, %v26_v20  ;;  %v28_v23 = vld [vmem:[%s451_s1 + $0x60] sm:$0xff]  ;;  %v29_v24 = vld [vmem:[%s451_s1 + $0x68] sm:$0xff]  ;;  %v30_v26 = vld [vmem:[%s451_s1 + $0x70] sm:$0xff] }
   0xa   :  { %v295_v25 = vpack.c.bf16 %v29_v24, %v28_v23  ;;  %v31_v27 = vld [vmem:[%s451_s1 + $0x78] sm:$0xff]  ;;  %v15_v29 = vld [vmem:[%s450_s0] sm:$0xff]  ;;  %s338_s0 = smov [#allocation2]  }
   0xb   :  { %v299_v28 = vpack.c.bf16 %v31_v27, %v30_v26  ;;  %s192_s1 = sshll.u32 %s338_s0, 4  ;;  %s193_s1 = int_to_ptr.vmem [resolvable:$true] %s192_s1 }
   0xc   :  { %277 = vmatpush3.bf16.xpose.msk.msra.mxu0 %vm367_vm1, %v275_v10  ;;  %s310_s20 = scalar_lea.vmem %s193_s1, 128  ;;  %p315_p1 = scmp.lt.s32.totalorder %s193_s1, %s193_s1 }
   0xd   :  { %278 = vmatprep.subr.bf16.mxu0 %v334_v2  ;;  %p311_p0 = scmp.ne.s32.totalorder %s193_s1, %s310_s20  ;;  %p316_p2 = scmp.lt.s32.totalorder %s310_s20, %s310_s20 }
   0xf   :  { %p317_p3 = por %p316_p2, %p315_p1 }
  0x11   :  { %p318_p4 = pnand %p317_p3, %p311_p0 }
  0x14   :  { %281 = vmatpush3.bf16.xpose.msk.msra.mxu0 %vm367_vm1, %v279_v13 }
  0x15   :  { %282 = vmatprep.subr.bf16.mxu0 %v334_v2 }
  0x1c   :  { %285 = vmatpush3.bf16.xpose.msk.msra.mxu0 %vm367_vm1, %v283_v16 }
  0x1d   :  { %286 = vmatprep.subr.bf16.mxu0 %v334_v2 }
  0x24   :  { %289 = vmatpush3.bf16.xpose.msk.msra.mxu0 %vm367_vm1, %v287_v19 }
  0x25   :  { %290 = vmatprep.subr.bf16.mxu0 %v334_v2 }
  0x2c   :  { %293 = vmatpush3.bf16.xpose.msk.msra.mxu0 %vm367_vm1, %v291_v22 }
  0x2d   :  { %294 = vmatprep.subr.bf16.mxu0 %v334_v2 }
  0x34   :  { %297 = vmatpush3.bf16.xpose.msk.msra.mxu0 %vm367_vm1, %v295_v25 }
  0x35   :  { %298 = vmatprep.subr.bf16.mxu0 %v334_v2 }
  0x3c   :  { %301 = vmatpush3.bf16.xpose.msk.msra.mxu0 %vm367_vm1, %v299_v28 }
  0x43   :  { %268 = vmatmul.mubr.msk.f32.vlgmr.msra.gmra.mrb[0].mxu0 %vm32_vm0, %v15_v29 }
  0x85   :  { %v162_v32 = vpop.permute.xlu0 %161 }
  0x86   :  { %vm163_vm3 = vcmp.eq.s32.totalorder %v157_v31, %v162_v32 }
 0x116   :  { %v150_v33 = vpop.f32.mrb[0].mxu0 }
 0x117   :  { %v269_v34 = vpop.f32.mrb[1].mxu0  ;;  %v164_v35 = vsel %vm163_vm3, %v150_v33, 0.0 }
 0x118   :  { %165 = vadd.xlane.f32.xlu0 %v164_v35 }
 0x1a5   :  { %v166_v36 = vpop.xlane.xlu0 %165 }
 0x1a6   :  { %v167_v37 = vmul.f32 0.033333335, %v166_v36 }
 0x1a8   :  { %v217_v38 = vclamps-f32 %v167_v37, 0.9999 }
 0x1aa   :  { %v170_v39 = vmul.f32 %v217_v38, %v217_v38  ;;  %v180_v47 = vmul.f32 0.9800666, %v217_v38 }
 0x1ac   :  { %v171_v40 = vsub.f32 1.0, %v170_v39 }
 0x1ae   :  { %v172_v41 = vmax.f32 %v171_v40, 0.0 }
 0x1b0   :  { %308 = vrsqrt.f32 %v172_v41  ;;  %vm175_vm4 = vcmp.eq.f32.partialorder %v172_v41, inf  ;;  %v178_v44 = vand.u32 2147483648, %v172_v41  ;;  %vm177_vm5 = vcmp.eq.f32.partialorder %v172_v41, 0.0 }
 0x1ba   :  { %v309_v42 = vpop.eup %308 }
 0x1bb   :  { %v174_v43 = vmul.f32 %v309_v42, %v172_v41 }
 0x1bd   :  { %v176_v45 = vsel %vm175_vm4, %v172_v41, %v174_v43 }
 0x1be   :  { %v179_v46 = vsel %vm177_vm5, %v178_v44, %v176_v45 }
 0x1bf   :  { %v181_v48 = vmul.f32 0.19866933, %v179_v46 }
 0x1c1   :  { %v182_v49 = vsub.f32 %v180_v47, %v181_v48 }
 0x1c3   :  { %v183_v50 = vmul.f32 30.0, %v182_v49 }
 0x1c5   :  { %v184_v51 = vsel %vm163_vm3, %v183_v50, %v150_v33 }
 0x1c6   :  { %185 = vst [vmem:[#allocation2] sm:$0xff] %v184_v51 }
 0x1c7   :  { %321 = shalt.err (!%p318_p4)
}
 0x1c8   :  { %s322_s23 = scalar_lea.hbm %s453_s3, 128 }
 0x1c9   :  { %p323_p5 = scmp.ne.s32.totalorder %s453_s3, %s322_s23  ;;  %p326_p6 = scmp.lt.u32.totalorder %s322_s23, %s453_s3 }
 0x1cb   :  { %p328_p7 = pnand %p326_p6, %p323_p5 }
 0x1cd   :  { %331 = shalt.err (!%p328_p7)
}
 0x1ce   :  { %195 = dma.vmem_to_hbm [thread:$0]  %s193_s1, 128, %s453_s3, [#allocation3]  }
 0x1cf   :  { %332 = dma.done.wait [#allocation3], 128  }
 0x1d0   :  { %333 = vsyncadd [#allocation3], 4294967168 }
 0x1d1   :  { %199 = vsyncpa [#allocation3], 1 }

</bundles_post_ra>
